<compile_context>
chip_gen: v7x
topology: tpu7x:2x2x1
jax: 0.10.0
libtpu: 0.0.40
codegen_flags: <defaults>
</compile_context>

<pallas_src>
import jax
import jax.numpy as jnp
from jax.experimental import pallas as pl
from jax.experimental.pallas import tpu as pltpu


_LANES = 128     # vreg lane width (fast axis)
_MIN_TM = 512    # rows; 256 KiB @ f32 -- below this, per-step overhead dominates


def _pad_to(x: int, m: int) -> int:
    return ((x + m - 1) // m) * m


def _make_decay_kernel(w: float, decay_method: str):
    """Builds a Pallas kernel body closed over static (w, decay_method)."""
    w = float(w)
    neg_w = -w          # folded at trace time
    e_const = 2.7183    # matches the PyTorch source (approximation of e)

    def kernel(dt_ref, out_ref):
        # Upcast in-register: compute stays f32 (v5e has no bf16 VPU/EUP path),
        # only the HBM I/O dtype narrows.
        dt = dt_ref[...].astype(jnp.float32)
        if decay_method == "exp":
            res = jnp.exp(neg_w * dt)                 # EUP exp
        elif decay_method == "log":
            res = 1.0 / jnp.log(e_const + w * dt)     # EUP log + exact divide
        else:  # "rev"
            res = 1.0 / (1.0 + w * dt)                # exact divide
        out_ref[...] = res.astype(out_ref.dtype)

    return kernel


def decay_layer(delta_t: jax.Array, w: float = 1.0,
                decay_method: str = "log", *, block_rows: int = 4096) -> jax.Array:
    """Pallas-backed DecayLayer.forward (elementwise decay of delta_t)."""
    if decay_method not in ("exp", "log", "rev"):
        # PyTorch falls through to self.exponetial_decay -> AttributeError.
        raise ValueError(f"unknown decay_method: {decay_method!r}")

    orig_shape = delta_t.shape
    orig_dtype = delta_t.dtype

    # I/O dtype: keep floating dtypes native (halves HBM traffic for bf16);
    # integer inputs are promoted to f32 (a float result, like PyTorch).
    if jnp.issubdtype(orig_dtype, jnp.floating):
        io_dtype = orig_dtype
    else:
        io_dtype = jnp.float32
    itemsize = jnp.dtype(io_dtype).itemsize
    sub = 8 * (4 // itemsize)          # sublane multiple: f32->8, bf16->16, int8/fp8->32

    # ---- wrapper-side layout plumbing: lane-dense (rows, 128) slab ----
    n = int(delta_t.size)
    flat = delta_t.reshape(-1)
    if io_dtype != orig_dtype:
        flat = flat.astype(io_dtype)

    rows = -(-n // _LANES)
    n_pad = rows * _LANES
    padded = n_pad != n
    if padded:
        # Pad only up to the next 128-lane row (zeros -> finite decay values,
        # discarded by the final slice).  Lane-aligned inputs skip this entirely.
        flat = jnp.pad(flat, (0, n_pad - n))
    slab = flat.reshape(rows, _LANES)

    # ---- block sizing ----
    if rows <= 2 * _MIN_TM:
        # Small / mid-small input: one block covering the whole slab.
        # Block shape == full array dims, so no (8,128) alignment needed.
        tm = rows
        grid = (1,)
    else:
        # Aim for >= ~4 blocks (v7x: shard across both TCs and still double-
        # buffer per TC), blocks in [_MIN_TM, block_rows] rows, sublane-aligned.
        tm = min(int(block_rows), max(_MIN_TM, _pad_to(pl.cdiv(rows, 4), sub)))
        tm = _pad_to(tm, sub)
        grid = (pl.cdiv(rows, tm),)    # ragged last block is masked by Pallas

    kernel = _make_decay_kernel(w, decay_method)

    transc_per_elem = 2 if decay_method == "log" else 1
    cost = pl.CostEstimate(
        flops=2 * n_pad,
        transcendentals=transc_per_elem * n_pad,
        bytes_accessed=2 * n_pad * itemsize,
    )

    out = pl.pallas_call(
        kernel,
        out_shape=jax.ShapeDtypeStruct((rows, _LANES), io_dtype),
        grid_spec=pltpu.PrefetchScalarGridSpec(
            num_scalar_prefetch=0,
            grid=grid,
            in_specs=[pl.BlockSpec((tm, _LANES), lambda i: (i, 0))],
            out_specs=pl.BlockSpec((tm, _LANES), lambda i: (i, 0)),
        ),
        compiler_params=pltpu.CompilerParams(
            dimension_semantics=("parallel",),   # shard blocks across TCs (v7x)
        ),
        cost_estimate=cost,
    )(slab)

    out_flat = out.reshape(-1)
    if padded:
        out_flat = out_flat[:n]
    return out_flat.reshape(orig_shape)


def _ref_decay(delta_t, w=1.0, decay_method="log"):
    delta_t = delta_t.astype(jnp.float32)
    if decay_method == "exp":
        return jnp.exp(-w * delta_t)
    elif decay_method == "log":
        return 1.0 / jnp.log(2.7183 + w * delta_t)
    elif decay_method == "rev":
        return 1.0 / (1.0 + w * delta_t)
    raise ValueError(decay_method)


if __name__ == "__main__":
    key = jax.random.PRNGKey(0)
    k0, k1, k2, k3 = jax.random.split(key, 4)

    # delta_t: non-negative time gaps. Primary shape [batch=2, seq=8, hidden=32].
    delta_t_small = jax.random.uniform(k0, (2, 8, 32), dtype=jnp.float32) * 10.0
    # Odd, non-128-aligned shape: exercises the lane-pad + trailing-slice path.
    delta_t_odd = jax.random.uniform(k1, (5, 33, 130), dtype=jnp.float32) * 10.0
    # Lane-aligned but larger: exercises the multi-block ragged grid path
    # (16*64*130 = 133120 = 1040 rows -> 3 blocks of 512 rows, last one ragged).
    delta_t_multi = jax.random.uniform(k2, (16, 64, 130), dtype=jnp.float32) * 10.0
    # bf16 input: exercises the native-dtype I/O path (f32 compute in-register).
    delta_t_bf16 = jax.random.uniform(k3, (2, 8, 32), dtype=jnp.bfloat16) * 10.0

    ok = True
    cases = (("small", delta_t_small), ("odd", delta_t_odd), ("multi", delta_t_multi))
    for name, dt in cases:
        for method in ("log", "exp", "rev"):
            out = decay_layer(dt, w=1.0, decay_method=method)
            jax.block_until_ready(out)
            ref = _ref_decay(dt, w=1.0, decay_method=method)
            if out.shape != dt.shape or out.dtype != dt.dtype:
                ok = False
                print(f"SHAPE/DTYPE MISMATCH for {name}/{method}")
            if not jnp.allclose(out, ref, rtol=1e-4, atol=1e-6):
                ok = False
                err = float(jnp.max(jnp.abs(out.astype(jnp.float32) - ref)))
                print(f"MISMATCH for {name}/{method}: max abs err={err:.3e}")

    # bf16: compute happens in f32; only the final store rounds to bf16.
    for method in ("log", "exp", "rev"):
        out = decay_layer(delta_t_bf16, w=1.0, decay_method=method)
        jax.block_until_ready(out)
        ref = _ref_decay(delta_t_bf16, w=1.0, decay_method=method)
        if out.dtype != jnp.bfloat16:
            ok = False
            print(f"DTYPE MISMATCH for bf16/{method}: {out.dtype}")
        if not jnp.allclose(out.astype(jnp.float32), ref, rtol=1.6e-2, atol=1e-3):
            ok = False
            err = float(jnp.max(jnp.abs(out.astype(jnp.float32) - ref)))
            print(f"MISMATCH for bf16/{method}: max abs err={err:.3e}")

    if ok:
        print("KERNEL_OK")
</pallas_src>

<mosaic_0001>
module attributes {stable_mosaic.version = 11 : i64} {
  func.func @kernel(%arg0: i32, %arg1: memref<4x128xf32, #tpu.memory_space<vmem>>, %arg2: memref<4x128xf32, #tpu.memory_space<vmem>>) attributes {dimension_semantics = [#tpu.dimension_semantics<parallel>], iteration_bounds = array<i64: 1>, scalar_prefetch = 0 : i64, scratch_operands = 0 : i64, tpu.core_type = #tpu.core_type<tc>, window_params = [{transform_indices = @transform_0, window_bounds = array<i64: 4, 128>}, {transform_indices = @transform_1, window_bounds = array<i64: 4, 128>}]} {
    %c0 = arith.constant 0 : index
    %c0_0 = arith.constant 0 : index
    %0 = vector.load %arg1[%c0, %c0_0] : memref<4x128xf32, #tpu.memory_space<vmem>>, vector<4x128xf32>
    %cst = arith.constant 1.000000e+00 : f32
    %1 = vector.broadcast %cst : f32 to vector<4x128xf32>
    %2 = arith.mulf %1, %0 : vector<4x128xf32>
    %cst_1 = arith.constant 2.718300e+00 : f32
    %3 = vector.broadcast %cst_1 : f32 to vector<4x128xf32>
    %4 = arith.addf %3, %2 : vector<4x128xf32>
    %5 = math.log %4 : vector<4x128xf32>
    %cst_2 = arith.constant 1.000000e+00 : f32
    %6 = vector.broadcast %cst_2 : f32 to vector<4x128xf32>
    %7 = arith.divf %6, %5 : vector<4x128xf32>
    %c0_3 = arith.constant 0 : index
    %c0_4 = arith.constant 0 : index
    %8 = vector.load %arg2[%c0_3, %c0_4] : memref<4x128xf32, #tpu.memory_space<vmem>>, vector<4x128xf32>
    tpu.vector_store %arg2[%c0_3, %c0_4], %7 {strides = array<i32>} : memref<4x128xf32, #tpu.memory_space<vmem>>, vector<4x128xf32>,
    return
  }
  func.func @transform_0(%arg0: i32) -> (i32, i32) {
    %c0_i32 = arith.constant 0 : i32
    %c0_i32_0 = arith.constant 0 : i32
    return %arg0, %c0_i32 : i32, i32
  }
  func.func @transform_1(%arg0: i32) -> (i32, i32) {
    %c0_i32 = arith.constant 0 : i32
    %c0_i32_0 = arith.constant 0 : i32
    return %arg0, %c0_i32 : i32, i32
  }
}

</mosaic_0001>

<bundles_post_ra>
// kernel: tpu_custom_call.1
= control target key start
LH: loop header
LB: loop body
LE: loop exit
PB: predicated region body
PF: predicated region fallthrough
CT: control target
= control target key end

     0   :  { %6 = vsyncpa [#allocation3], 0  ;;  %s133_s0 = inlined_call_operand.hbm [shape: f32[4,128], index: 0, kind: input, shape index: {}]   ;;  %s134_s1 = inlined_call_operand.hbm [shape: f32[4,128], index: 1, kind: output, shape index: {}]  }
   0x1   :  { %7 = vsyncpa [#allocation4], 0  ;;  %s97_s6 = smov [#allocation2]   ;;  %s49_s10 = scalar_lea.hbm %s133_s0, 64 }
   0x2   :  { %s14_s7 = sshll.u32 %s97_s6, 4  ;;  %p50_p0 = scmp.ne.s32.totalorder %s133_s0, %s49_s10  ;;  %s15_s7 = int_to_ptr.vmem [resolvable:$true] %s14_s7 }
   0x3   :  { %p53_p1 = scmp.lt.u32.totalorder %s49_s10, %s133_s0 }
   0x5   :  { %p55_p2 = pnand %p53_p1, %p50_p0 }
   0x7   :  { %58 = shalt.err (!%p55_p2)
}
   0x8   :  { %s59_s15 = scalar_lea.vmem %s15_s7, 64  ;;  %p64_p4 = scmp.lt.s32.totalorder %s15_s7, %s15_s7 }
   0x9   :  { %p60_p3 = scmp.ne.s32.totalorder %s15_s7, %s59_s15  ;;  %p65_p5 = scmp.lt.s32.totalorder %s59_s15, %s59_s15 }
   0xb   :  { %p66_p6 = por %p65_p5, %p64_p4 }
   0xd   :  { %p67_p7 = pnand %p66_p6, %p60_p3 }
   0xf   :  { %70 = shalt.err (!%p67_p7)
}
  0x10   :  { %17 = dma.hbm_to_vmem [thread:$0]  %s133_s0, 64, %s15_s7, [#allocation3]  }
  0x11   :  { %93 = dma.done.wait [#allocation3], 64  }
  0x12   :  { %94 = vsyncadd [#allocation3], 4294967232  ;;  %v21_v0 = vld [vmem:[#allocation2] sm:$0xf]  ;;  %s98_s18 = smov [#allocation5]  }
  0x13   :  { %v22_v1 = vadd.f32 2.7183, %v21_v0  ;;  %s34_s19 = sshll.u32 %s98_s18, 4  ;;  %s35_s19 = int_to_ptr.vmem [resolvable:$true] %s34_s19 }
  0x14   :  { %s71_s20 = scalar_lea.vmem %s35_s19, 64  ;;  %p76_p9 = scmp.lt.s32.totalorder %s35_s19, %s35_s19 }
  0x15   :  { %45 = vlog2.f32 %v22_v1  ;;  %p72_p8 = scmp.ne.s32.totalorder %s35_s19, %s71_s20  ;;  %p77_p10 = scmp.lt.s32.totalorder %s71_s20, %s71_s20 }
  0x17   :  { %p78_p11 = por %p77_p10, %p76_p9 }
  0x19   :  { %p79_p12 = pnand %p78_p11, %p72_p8 }
  0x1f   :  { %v46_v2 = vpop.eup %45 }
  0x20   :  { %v24_v3 = vmul.f32 0.6931472, %v46_v2 }
  0x22   :  { %47 = vrcp.f32 %v24_v3 }
  0x2c   :  { %v48_v4 = vpop.eup %47 }
  0x2d   :  { %27 = vst [vmem:[#allocation5] sm:$0xf] %v48_v4 }
  0x2e   :  { %82 = shalt.err (!%p79_p12)
}
  0x2f   :  { %s83_s22 = scalar_lea.hbm %s134_s1, 64 }
  0x30   :  { %p84_p13 = scmp.ne.s32.totalorder %s134_s1, %s83_s22  ;;  %p87_p0 = scmp.lt.u32.totalorder %s83_s22, %s134_s1 }
  0x32   :  { %p89_p1 = pnand %p87_p0, %p84_p13 }
  0x34   :  { %92 = shalt.err (!%p89_p1)
}
  0x35   :  { %37 = dma.vmem_to_hbm [thread:$0]  %s35_s19, 64, %s134_s1, [#allocation4]  }
  0x36   :  { %95 = dma.done.wait [#allocation4], 64  }
  0x37   :  { %96 = vsyncadd [#allocation4], 4294967232 }
  0x38   :  { %41 = vsyncpa [#allocation3], 1 }
  0x39   :  { %42 = vsyncpa [#allocation4], 1 }

</bundles_post_ra>
